<compile_context>
chip_gen: v5e
topology: v5e:2x2
jax: 0.10.0
libtpu: 0.0.40
codegen_flags: <defaults>
</compile_context>

<pallas_src>
import functools
import math

import jax
import jax.numpy as jnp
from jax.experimental import pallas as pl
from jax.experimental.pallas import tpu as pltpu


# ----------------------------------------------------------------------------
# Pass 1: per-(batch, lane) sum of squares, accumulated over spatial tiles.
# ----------------------------------------------------------------------------
def _grn_ssq_kernel(x_ref, ssq_ref):
    # x_ref:   (1, TR, L)   one spatial tile, lane-packed channels
    # ssq_ref: (1, 1, L)    resident accumulator across the tile axis
    @pl.when(pl.program_id(1) == 0)
    def _():
        ssq_ref[...] = jnp.zeros_like(ssq_ref)

    xv = x_ref[0].astype(jnp.float32)                       # (TR, L)
    ssq_ref[...] = ssq_ref[...] + jnp.sum(xv * xv, axis=0)[None, None, :]


# ----------------------------------------------------------------------------
# Pass 2: y = x * scale + bias   (scale = gamma*Nx + 1, bias = beta)
# ----------------------------------------------------------------------------
def _grn_apply_kernel(x_ref, scale_ref, bias_ref, o_ref):
    # x_ref/o_ref: (1, TR, L); scale_ref: (1, 1, L); bias_ref: (1, 1, L)
    o_ref[...] = (x_ref[...] * scale_ref[...] + bias_ref[...]).astype(o_ref.dtype)


# ----------------------------------------------------------------------------
# Helpers
# ----------------------------------------------------------------------------
def _pick_block_rows(R, target):
    """Largest divisor of R that is a multiple of 8 and <= target (else R)."""
    if R <= target:
        return R
    for d in range(min(target, R), 7, -1):
        if R % d == 0 and d % 8 == 0:
            return d
    return R


def _lane_packing(S, C):
    """Fold g spatial positions into lanes so the lane dim is a multiple of 128."""
    if C % 128 == 0:
        return 1
    g = 128 // math.gcd(C, 128)
    if S % g != 0:
        return 1        # fallback: correct but lane-masked
    return g


# ----------------------------------------------------------------------------
# Public forward
# ----------------------------------------------------------------------------
def grn_pallas(x, gamma, beta, *, block_rows=256, eps=1e-6):
    """x: (B, H, W, C) channels-last; gamma/beta: (1, C)."""
    B, H, W, C = x.shape
    S = H * W
    g = _lane_packing(S, C)
    L = C * g                       # lane width (multiple of 128 when packed)
    R = S // g                      # packed rows per batch element
    xp = x.reshape(B, R, L)         # lane index = i*C + c  (i in [0, g))

    TR = _pick_block_rows(R, block_rows)
    n_tiles = R // TR

    vmem_limit = 32 * 1024 * 1024   # safe on v5e/v6e/v7x
    bytes_x = 4 * B * S * C

    # ---- pass 1: sum of squares per (batch, lane) ---------------------------
    ssq = pl.pallas_call(
        _grn_ssq_kernel,
        out_shape=jax.ShapeDtypeStruct((B, 1, L), jnp.float32),
        grid=(B, n_tiles),
        in_specs=[pl.BlockSpec((1, TR, L), lambda b, t: (b, t, 0))],
        out_specs=pl.BlockSpec((1, 1, L), lambda b, t: (b, 0, 0)),
        compiler_params=pltpu.CompilerParams(
            dimension_semantics=("parallel", "arbitrary"),
            vmem_limit_bytes=vmem_limit),
        cost_estimate=pl.CostEstimate(
            flops=2 * B * S * C, transcendentals=0, bytes_accessed=bytes_x),
    )(xp)

    # ---- tiny per-(batch, channel) math in plain JAX ------------------------
    ssq_c = ssq.reshape(B, g, C).sum(axis=1)                        # (B, C)
    gx = jnp.sqrt(ssq_c)                                            # ||x||_2
    nx = gx / (jnp.mean(gx, axis=-1, keepdims=True) + eps)          # (B, C)
    scale_c = gamma.reshape(1, C) * nx + 1.0     # fold the "+ x" into scale
    scale = jnp.tile(scale_c, (1, g)).reshape(B, 1, L).astype(x.dtype)
    bias = jnp.tile(beta.reshape(1, C), (1, g)).reshape(1, 1, L).astype(x.dtype)

    # ---- pass 2: elementwise apply ------------------------------------------
    out = pl.pallas_call(
        _grn_apply_kernel,
        out_shape=jax.ShapeDtypeStruct((B, R, L), x.dtype),
        grid=(B, n_tiles),
        in_specs=[pl.BlockSpec((1, TR, L), lambda b, t: (b, t, 0)),
                  pl.BlockSpec((1, 1, L), lambda b, t: (b, 0, 0)),
                  pl.BlockSpec((1, 1, L), lambda b, t: (0, 0, 0))],
        out_specs=pl.BlockSpec((1, TR, L), lambda b, t: (b, t, 0)),
        compiler_params=pltpu.CompilerParams(
            dimension_semantics=("parallel", "parallel"),
            vmem_limit_bytes=vmem_limit),
        cost_estimate=pl.CostEstimate(
            flops=2 * B * S * C, transcendentals=0, bytes_accessed=2 * bytes_x),
    )(xp, scale, bias)

    return out.reshape(B, H, W, C)


# ----------------------------------------------------------------------------
# Pure-JAX reference (mirrors the PyTorch module exactly)
# ----------------------------------------------------------------------------
def grn_reference(x, gamma, beta, eps=1e-6):
    gx = jnp.sqrt(jnp.sum(x * x, axis=(1, 2), keepdims=True))       # (B,1,1,C)
    nx = gx / (jnp.mean(gx, axis=-1, keepdims=True) + eps)
    return gamma.reshape(1, 1, 1, -1) * (x * nx) + beta.reshape(1, 1, 1, -1) + x


if __name__ == "__main__":
    B, H, W, C = 2, 16, 16, 32
    key = jax.random.PRNGKey(0)
    kx, kg, kb = jax.random.split(key, 3)
    x = jax.random.normal(kx, (B, H, W, C), dtype=jnp.float32)
    # The module initializes gamma/beta to zeros (identity map); use random
    # values here so the test exercises the full forward computation.
    gamma = 0.1 * jax.random.normal(kg, (1, C), dtype=jnp.float32)
    beta = 0.1 * jax.random.normal(kb, (1, C), dtype=jnp.float32)

    # block_rows=16 -> 4 spatial tiles per batch: exercises the cross-tile
    # accumulation path even at this small test size.
    out = jax.block_until_ready(grn_pallas(x, gamma, beta, block_rows=16))
    ref = jax.block_until_ready(grn_reference(x, gamma, beta))

    assert out.shape == ref.shape, (out.shape, ref.shape)
    max_err = float(jnp.max(jnp.abs(out - ref)))
    assert max_err < 1e-4, max_err
    print("KERNEL_OK")
</pallas_src>

<mosaic_0001>
module attributes {stable_mosaic.version = 11 : i64} {
  func.func @_grn_ssq_kernel(%arg0: i32, %arg1: i32, %arg2: memref<1x16x128xf32, #tpu.memory_space<vmem>>, %arg3: memref<1x1x128xf32, #tpu.memory_space<vmem>>) attributes {dimension_semantics = [#tpu.dimension_semantics<parallel>, #tpu.dimension_semantics<arbitrary>], iteration_bounds = array<i64: 2, 4>, scalar_prefetch = 0 : i64, scratch_operands = 0 : i64, tpu.core_type = #tpu.core_type<tc>, window_params = [{transform_indices = @transform_0, window_bounds = array<i64: 1, 16, 128>}, {transform_indices = @transform_1, window_bounds = array<i64: 1, 1, 128>}]} {
    %c0_i32 = arith.constant 0 : i32
    %0 = arith.cmpi eq, %arg1, %c0_i32 : i32
    %1 = arith.extui %0 : i1 to i32
    %c0_i32_0 = arith.constant 0 : i32
    %2 = arith.cmpi ne, %1, %c0_i32_0 : i32
    scf.if %2 {
      %cst_9 = arith.constant 0.000000e+00 : f32
      %11 = vector.broadcast %cst_9 : f32 to vector<1x1x128xf32>
      %c0_10 = arith.constant 0 : index
      %c0_11 = arith.constant 0 : index
      %c0_12 = arith.constant 0 : index
      %12 = vector.load %arg3[%c0_10, %c0_11, %c0_12] : memref<1x1x128xf32, #tpu.memory_space<vmem>>, vector<1x1x128xf32>
      tpu.vector_store %arg3[%c0_10, %c0_11, %c0_12], %11 {strides = array<i32>} : memref<1x1x128xf32, #tpu.memory_space<vmem>>, vector<1x1x128xf32>,
    } else {
    }
    %c0 = arith.constant 0 : index
    %c0_1 = arith.constant 0 : index
    %c0_2 = arith.constant 0 : index
    %3 = vector.load %arg2[%c0, %c0_1, %c0_2] : memref<1x16x128xf32, #tpu.memory_space<vmem>>, vector<1x16x128xf32>
    %4 = vector.shape_cast %3 : vector<1x16x128xf32> to vector<16x128xf32>
    %c0_3 = arith.constant 0 : index
    %c0_4 = arith.constant 0 : index
    %c0_5 = arith.constant 0 : index
    %5 = vector.load %arg3[%c0_3, %c0_4, %c0_5] : memref<1x1x128xf32, #tpu.memory_space<vmem>>, vector<1x1x128xf32>
    %6 = arith.mulf %4, %4 : vector<16x128xf32>
    %cst = arith.constant dense<0.000000e+00> : vector<128xf32>
    %7 = vector.multi_reduction <add>, %6, %cst [0] : vector<16x128xf32> to vector<128xf32>
    %8 = vector.shape_cast %7 : vector<128xf32> to vector<1x1x128xf32>
    %9 = arith.addf %5, %8 : vector<1x1x128xf32>
    %c0_6 = arith.constant 0 : index
    %c0_7 = arith.constant 0 : index
    %c0_8 = arith.constant 0 : index
    %10 = vector.load %arg3[%c0_6, %c0_7, %c0_8] : memref<1x1x128xf32, #tpu.memory_space<vmem>>, vector<1x1x128xf32>
    tpu.vector_store %arg3[%c0_6, %c0_7, %c0_8], %9 {strides = array<i32>} : memref<1x1x128xf32, #tpu.memory_space<vmem>>, vector<1x1x128xf32>,
    return
  }
  func.func @transform_0(%arg0: i32, %arg1: i32) -> (i32, i32, i32) {
    %c0_i32 = arith.constant 0 : i32
    %c0_i32_0 = arith.constant 0 : i32
    return %arg0, %arg1, %c0_i32 : i32, i32, i32
  }
  func.func @transform_1(%arg0: i32, %arg1: i32) -> (i32, i32, i32) {
    %c0_i32 = arith.constant 0 : i32
    %c0_i32_0 = arith.constant 0 : i32
    %c0_i32_1 = arith.constant 0 : i32
    return %arg0, %c0_i32, %c0_i32_0 : i32, i32, i32
  }
}

</mosaic_0001>

<bundles_post_ra>
// kernel: tpu_custom_call.1
= control target key start
LH: loop header
LB: loop body
LE: loop exit
PB: predicated region body
PF: predicated region fallthrough
CT: control target
= control target key end

     0   :  { %6 = vsyncpa [#allocation3], 0  ;;  %s717_s0 = inlined_call_operand.hbm [shape: f32[2,64,128], index: 0, kind: input, shape index: {}]   ;;  %s718_s1 = inlined_call_operand.hbm [shape: f32[2,1,128], index: 1, kind: output, shape index: {}]  }
   0x1   :  { %8 = vsyncpa [#allocation3 + $0x1], 0 }
   0x2   :  { %9 = vsyncpa [#allocation4], 0 }
   0x3   :  { %11 = vsyncpa [#allocation4 + $0x1], 0  ;;  %s550_s6 = smov 0   ;;  %s552_s7 = smov 0  }
   0x4   :  { %s554_s8 = smov 0   ;;  %s556_s9 = smov 0  }
   0x5   :  { %s558_s10 = smov 0   ;;  %s560_s11 = smov 0  }
   0x6   :  { %s562_s12 = smov 0   ;;  %s564_s13 = smov 0  }
   0x7   :  { %s566_s14 = smov 0   ;;  %s568_s15 = smov 0  }
   0x8   :  { %s570_s16 = smov 0  }
   0x9 LB: > { %722 = sst [smem:[#allocation8_spill]] %s515_s11  ;;  %s265_s17 = sadd.s32 4294967295, %s535_s16   ;;  %s535_s16 = sphi %s570_s16, %s17_s16   ;;  %s531_s15 = sphi %s568_s15, %s742_s15   ;;  %s527_s14 = sphi %s566_s14, %s741_s14   ;;  %s523_s13 = sphi %s564_s13, %s740_s13   ;;  %s519_s12 = sphi %s562_s12, %s739_s12   ;;  %s515_s11 = sphi %s560_s11, %s731_s11   ;;  %s511_s10 = sphi %s558_s10, %s738_s10   ;;  %s507_s9 = sphi %s556_s9, %s737_s9   ;;  %s503_s8 = sphi %s554_s8, %s736_s8   ;;  %s499_s7 = sphi %s552_s7, %s735_s7   ;;  %s495_s6 = sphi %s550_s6, %s734_s6  }
   0xa   : > { %s266_s18 = sadd.s32 4294967294, %s535_s16   ;;  %s26_s19 = sadd.s32 1, %s527_s14 }
   0xb   : > { %s29_s20 = sadd.s32 1, %s531_s15  ;;  %p27_p0 = scmp.ge.s32.totalorder %s26_s19, 4 }
   0xc   : > { %s38_s21 = sadd.s32 1, %s515_s11  ;;  %p45_p1 = scmp.ne.s32.totalorder %s515_s11, %s511_s10 }
   0xd   : > { %p46_p2 = scmp.eq.s32.totalorder %s535_s16, 0  ;;  %s744_s19 = smov (%p27_p0, %s26_s19), 0 }
   0xe   : > { %723 = sst [smem:[#allocation9_spill]] %s744_s19  ;;  %s746_s20 = smov (!%p27_p0, %s29_s20), %s531_s15 }
   0xf   : > { %s34_s22 = ssub.s32 %s527_s14, %s744_s19  ;;  %p616_p3 = por %p46_p2, %p45_p1 }
  0x10   : > { %p31_p4 = scmp.ge.s32.totalorder %s746_s20, 2  ;;  %p51_p5 = scmp.ne.s32.totalorder %s511_s10, %s507_s9 }
  0x11   : > { %p52_p6 = scmp.eq.s32.totalorder %s265_s17, 0  ;;  %s64_s24 = sadd.s32 1, %s503_s8 }
  0x12   : > { %s748_s20 = smov (%p31_p4, %s746_s20), 0  ;;  %p74_p8 = scmp.ne.s32.totalorder %s503_s8, %s499_s7 }
  0x13   : > { %725 = sst [smem:[#allocation10_spill]] %s748_s20  ;;  %p624_p7 = por %p52_p6, %p51_p5 }
  0x14   : > { %s33_s26 = ssub.s32 %s531_s15, %s748_s20  ;;  %p75_p9 = scmp.eq.s32.totalorder %s265_s17, 7 }
  0x15   : > { %s35_s27 = sor.u32 %s34_s22, %s33_s26  ;;  %p62_p10 = scmp.eq.s32.totalorder %s33_s26, 0 }
  0x16   : > { %p36_p11 = scmp.eq.s32.totalorder %s35_s27, 0  ;;  %p632_p12 = por %p75_p9, %p74_p8 }
  0x17   : > { %s637_s29 = scalar_select %p62_p10, %s503_s8, %s64_s24  }
  0x18   : > { %s640_s30 = scalar_select %p36_p11, %s515_s11, %s38_s21  }
  0x19   : > { %p80_p13 = scmp.ne.s32.totalorder %s499_s7, %s495_s6  ;;  %p81_p0 = scmp.eq.s32.totalorder %s266_s18, 7 }
  0x1a   : > { %728 = sst [smem:[#allocation11_spill]] %s640_s30  ;;  %p290_p1 = scmp.lt.s32.totalorder %s535_s16, 8 }
  0x1b   : > { %p645_p2 = por %p81_p0, %p80_p13  ;;  %s101_s3 = sand.u32 1, %s515_s11  }
  0x1c   : > { %s269_s4 = sshll.u32 %s101_s3, 4  ;;  %s270_s5 = sshll.u32 %s527_s14, 1 }
  0x1d   : > { %s271_s9 = sshll.u32 %s531_s15, 3  ;;  %s105_s17 = scalar_lea.vmem [#allocation2], %s269_s4 }
  0x1e   : > { %s115_s22 = sshll.u32 %s105_s17, 4  ;;  %s110_s26 = sadd.s32 %s271_s9, %s270_s5  ;;  %s116_s22 = int_to_ptr.vmem [resolvable:$true] %s115_s22 }
  0x1f   : > { %s272_s24 = sshll.u32 %s110_s26, 3  ;;  %p283_p4 = pnand %p290_p1, %p616_p3 }
  0x20   : > { %s112_s27 = scalar_lea.hbm %s717_s0, %s272_s24  ;;  %s102_s19 = scalar_lea.sflag [#allocation3], %s101_s3 }
  0x21   : > { %s113_s20 = sshll.u32 %s112_s27, 4  ;;  %s537_s30 = smov 128   ;;  %s114_s20 = int_to_ptr.hbm [resolvable:$true] %s113_s20 }
  0x22   : > { %s538_s11 = smov 8   ;;  %p273_p5 = scmp.ge.s32.totalorder %s535_s16, 1 }
  0x23   : > { %285 = dma.hbm_to_vmem [thread:$0]  (!%p283_p4), %s114_s20, 256, %s116_s22, %s102_s19, %s537_s30, %s537_s30, %s538_s11  }
  0x24   : > { %p123_p6 = scmp.lt.s32.totalorder %s535_s16, 9 }
  0x26   : > { %p124_p8 = pnand %p273_p5, %p123_p6 }
  0x27   : > { %s129_s4 = sand.u32 (!%p124_p8), 1, %s511_s10  }
  0x28   : > { %127 = sbr.rel (%p124_p8) target bundleno = 77 (0x4d), region = 24  ;;  %s274_s5 = sshll.u32 (!%p124_p8), %s129_s4, 4 }
  0x29   : > { %s130_s23 = scalar_lea.sflag (!%p124_p8), [#allocation3], %s129_s4  ;;  %s133_s9 = scalar_lea.vmem (!%p124_p8), [#allocation2], %s274_s5 }
  0x2d   : > { %486 = dma.done.wait (%p624_p7), %s130_s23, 256  }
  0x2e   : > { %488 = vsyncadd (%p624_p7), %s130_s23, 4294967040  ;;  %s150_s3 = sand.u32 1, %s499_s7   ;;  %p275_p3 = scmp.ne.s32.totalorder %s519_s12, 0 }
  0x2f   : > { %s151_s17 = scalar_lea.vmem [#allocation5], %s150_s3 }
  0x30   : > { %156 = sbr.rel (%p275_p3) target bundleno = 55 (0x37), region = 32 }
  0x35   : > { %v539_v0 = vmov 0.0  }
  0x36   : > { %157 = vst [vmem:[%s151_s17] sm:$0x1] %v539_v0 }
  0x37 PF: > { %v158_v1 = vld [vmem:[%s133_s9] sm:$0xff]  ;;  %v159_v2 = vld [vmem:[%s133_s9 + $0x8] sm:$0xff]  ;;  %s181_s20 = scalar_lea.hbm %s718_s1, %s523_s13  ;;  %s183_s12 = sshll.u32 %s151_s17, 4  ;;  %s184_s12 = int_to_ptr.vmem [resolvable:$true] %s183_s12 }
  0x38   : > { %v161_v3 = vmul.f32 %v158_v1, %v158_v1  ;;  %v162_v4 = vmul.f32 %v159_v2, %v159_v2  ;;  %s185_s25 = sshll.u32 %s181_s20, 4  ;;  %s173_s30 = scalar_lea.sflag [#allocation4], %s150_s3  ;;  %s186_s25 = int_to_ptr.hbm [resolvable:$true] %s185_s25 }
  0x39   : > { %s427_s22 = sshra.s32 %s186_s25, 4  ;;  %s433_s13 = scalar_lea.hbm %s718_s1, 2  ;;  %s428_s22 = int_to_ptr.hbm [resolvable:$true] %s427_s22 }
  0x3a   : > { %v163_v5 = vadd.f32 %v162_v4, %v161_v3  ;;  %s429_s26 = scalar_lea.hbm %s428_s22, 1  ;;  %p434_p11 = scmp.lt.s32.totalorder %s428_s22, %s718_s1 }
  0x3b   : > { %p430_p7 = scmp.ne.s32.totalorder %s428_s22, %s429_s26  ;;  %p435_p13 = scmp.lt.s32.totalorder %s433_s13, %s429_s26 }
  0x3c   : > { %v164_v6 = vrot.slane %v163_v5, 4 }
  0x3d   : > { %v160_v11 = vld [vmem:[%s151_s17] sm:$0x1]  ;;  %p431_p9 = pnand %p430_p7, %p632_p12  ;;  %p436_p0 = por %p435_p13, %p434_p11 }
  0x3e   : > { %v165_v7 = vadd.f32 %v164_v6, %v163_v5 }
  0x3f   : > { %p432_p10 = pneg %p431_p9 }
  0x40   : > { %v166_v8 = vrot.slane %v165_v7, 2 }
  0x41   : > { %p437_p1 = pnand %p436_p0, %p432_p10 }
  0x42   : > { %v167_v9 = vadd.f32 %v166_v8, %v165_v7 }
  0x44   : > { %v168_v10 = vrot.slane %v167_v9, 1 }
  0x46   : > { %v169_v12 = vadd.f32 %v168_v10, %v167_v9 }
  0x48   : > { %v170_v13 = vadd.f32 %v169_v12, %v160_v11 }
  0x4a   : > { %171 = vst [vmem:[%s151_s17] sm:$0x1] %v170_v13 }
  0x4b   : > { %440 = shalt.err (!%p437_p1)
}
  0x4c   : > { %280 = dma.vmem_to_hbm [thread:$0]  (%p632_p12), %s184_s12, 16, %s186_s25, %s173_s30  }
  0x4d PF: > { %p291_p4 = scmp.ge.s32.totalorder %s535_s16, 2  ;;  %s197_s4 = sand.u32 1, %s495_s6  }
  0x4e   : > { %s198_s5 = scalar_lea.sflag [#allocation4], %s197_s4 }
  0x4f   : > { %p287_p5 = pnand %p291_p4, %p645_p2 }
  0x51   : > { %p288_p6 = pneg %p287_p5 }
  0x53   : > { %490 = dma.done.wait (%p288_p6), %s198_s5, 16  }
  0x54   : > { %492 = vsyncadd (%p288_p6), %s198_s5, 4294967280  ;;  %s17_s16 = sadd.s32 1, %s535_s16   ;;  %s730_s28 = sld [smem:[#allocation8_spill]] }
  0x55   : > { %p14_p8 = scmp.ge.s32.totalorder %s17_s16, 10   ;;  %s731_s11 = sld [smem:[#allocation11_spill]] }
  0x56   : > { %s732_s23 = sld [smem:[#allocation9_spill]]  ;;  %s734_s6 = smov %s499_s7 }
  0x57   : > { %s733_s3 = sld [smem:[#allocation10_spill]]  ;;  %s735_s7 = smov %s503_s8 }
  0x58   : > { %s736_s8 = smov %s637_s29  ;;  %s737_s9 = smov %s511_s10 }
  0x59   : > { %s739_s12 = smov %s527_s14  ;;  %s740_s13 = smov %s531_s15 }
  0x5a   : > { %s738_s10 = smov %s730_s28  ;;  %16 = sbr.rel (!%p14_p8) target bundleno = 9 (0x9), region = 73 }
  0x5c   : > { %s741_s14 = smov %s732_s23 }
  0x5d   : > { %s742_s15 = smov %s733_s3 }
  0x5f   :  { %203 = vsyncpa [#allocation3], 1 }
  0x60   :  { %205 = vsyncpa [#allocation3 + $0x1], 1 }
  0x61   :  { %206 = vsyncpa [#allocation4], 1 }
  0x62   :  { %208 = vsyncpa [#allocation4 + $0x1], 1 }

</bundles_post_ra>
